<compile_context>
chip_gen: v7x
topology: tpu7x:2x2x1
jax: 0.10.0
libtpu: 0.0.40
codegen_flags: <defaults>
</compile_context>

<pallas_src>
import jax
import jax.numpy as jnp
import numpy as np
from jax.experimental import pallas as pl
from jax.experimental.pallas import tpu as pltpu


def _head_kernel(feats_ref, age_ref, wrep_ref, wab_ref, out_ref):
    """Grid = (NP, NB, NK): (parallel K partitions, parallel batch blocks, K reduction).

    feats_ref: (TB, TK) VMEM  -- lane-dense slice of the flat (B, C*H*W) feature view
    age_ref:   (TB, 1)  VMEM  -- age scalar per batch element
    wrep_ref:  (1, TK)  VMEM  -- spatially repeated Linear weight slice, pre-scaled by 1/S
    wab_ref:   (2,)     SMEM  -- [weight_for_age, bias]
    out_ref:   (TB, 1)  VMEM  -- resident partial-output accumulator (leading NP dim squeezed)
    """
    p = pl.program_id(0)
    k = pl.program_id(2)

    @pl.when(k == 0)
    def _():
        out_ref[...] = jnp.zeros_like(out_ref)

    # Fused avg-pool + Linear partial: VPU multiply + lane reduce, hidden under the DMA.
    x = feats_ref[...].astype(jnp.float32)                              # (TB, TK)
    out_ref[...] += jnp.sum(x * wrep_ref[...], axis=-1, keepdims=True)  # (TB, 1)

    # Only the p == 0 partial carries the age term and bias (wrapper sums the partials).
    @pl.when((k == pl.num_programs(2) - 1) & (p == 0))
    def _():
        out_ref[...] += age_ref[...] * wab_ref[0] + wab_ref[1]


def _pick_tiles(B, K, feat_itemsize, *, feat_block_budget_bytes=8 << 20):
    """Tiling for the flat (B, K=C*H*W) feature view.

    Returns (TB, TK, NP, NK, vmem_limit_bytes):
      TB  batch tile   -- sublane-aligned (8 f32 / 16 bf16 / 32 int8) or the whole batch
      TK  lane tile    -- 128-multiple divisor of K sized to ~8 MiB of (padded) VMEM
      NP  parallel K partitions (2 only when the batch axis alone can't feed both v7x TCs)
      NK  reduction steps per partition (grid K-axis extent)
    """
    sublane = max(8, 32 // feat_itemsize)  # 8 for f32, 16 for bf16, 32 for int8/fp8

    # Batch tile: split in two (v7x megacore) only if the halves stay sublane-aligned.
    TB = B // 2 if (B % (2 * sublane) == 0) else B
    padded_rows = -(-TB // sublane) * sublane

    # Lane tile: largest 128-multiple divisor of K whose padded block fits the budget.
    if K % 128 != 0:
        TK = K  # whole-dim block is always a legal block shape
    else:
        max_tk = max(128, feat_block_budget_bytes // (padded_rows * feat_itemsize))
        if K <= max_tk:
            TK = K
        else:
            TK = 128
            cand = (max_tk // 128) * 128
            while cand >= 128:
                if K % cand == 0:
                    TK = cand
                    break
                cand -= 128

    NB = B // TB
    NK_total = K // TK

    # v7x: if the batch axis collapsed to a single block, split the K reduction into two
    # "parallel" halves producing partial (B, 1) outputs summed in the wrapper.
    NP = 1
    if NB == 1:
        if NK_total == 1 and K % 256 == 0:
            TK, NK_total = K // 2, 2
        if NK_total % 2 == 0:
            NP = 2
    NK = NK_total // NP

    # VMEM: double-buffered feature + weight blocks, plus headroom.
    feat_block = padded_rows * TK * feat_itemsize
    w_block = 8 * TK * 4  # (1, TK) f32 block, sublane-padded to 8 rows
    need = 2 * (feat_block + w_block) + (2 << 20)
    # >= 32 MiB lifts v5e's 16 MiB scoped default; <= 64 MiB respects v7x physical VMEM.
    vmem_limit = int(min(64 << 20, max(32 << 20, need)))
    return TB, TK, NP, NK, vmem_limit


def mymodel_head(features_nchw, age, l0_weight, l0_bias):
    """features_nchw: (B, 1408, H, W)  output of forward_features (NCHW, f32 or bf16)
       age:           (B,)
       l0_weight:     (1, 1409)        torch nn.Linear(1409, 1).weight layout
       l0_bias:       (1,)
       returns:       (B, 1) f32
    """
    B, C, H, W = features_nchw.shape
    S = H * W
    K = C * S

    # Free row-major reshape: (B, C, H, W) -> (B, C*H*W). Lane-dense, no transpose/copy.
    feats = features_nchw.reshape(B, K)

    # Spatially repeated Linear weight with the 1/S mean folded in:
    #   w_rep[c*S + s] = W[0, c] / S   =>   feats @ w_rep == mean-pooled-feats @ W[:, :C].T
    w_rep = (jnp.repeat(l0_weight[0, :C].astype(jnp.float32), S) * (1.0 / S)).reshape(1, K)
    # Age weight + bias ride along as SMEM scalars (USE_AGE=True, USE_GENDER=False
    # => the age column is the last Linear input, index C).
    wab = jnp.stack([l0_weight[0, C], l0_bias[0]]).astype(jnp.float32)
    age2d = age.reshape(B, 1).astype(jnp.float32)

    TB, TK, NP, NK, vmem_limit = _pick_tiles(B, K, feats.dtype.itemsize)
    grid = (NP, B // TB, NK)

    cost = pl.CostEstimate(
        flops=2 * B * K,
        transcendentals=0,
        bytes_accessed=B * K * feats.dtype.itemsize + K * 4 + B * 8 + NP * B * 4,
    )

    partials = pl.pallas_call(
        _head_kernel,
        out_shape=jax.ShapeDtypeStruct((NP, B, 1), jnp.float32),
        grid_spec=pltpu.PrefetchScalarGridSpec(
            num_scalar_prefetch=0,
            grid=grid,
            in_specs=[
                pl.BlockSpec((TB, TK), lambda p, b, k: (b, p * NK + k)),   # feature tile
                pl.BlockSpec((TB, 1), lambda p, b, k: (b, 0)),             # age
                pl.BlockSpec((1, TK), lambda p, b, k: (0, p * NK + k)),    # repeated weight
                pl.BlockSpec(memory_space=pltpu.MemorySpace.SMEM),         # [w_age, bias]
            ],
            out_specs=pl.BlockSpec((None, TB, 1), lambda p, b, k: (p, b, 0)),
        ),
        compiler_params=pltpu.CompilerParams(
            dimension_semantics=("parallel", "parallel", "arbitrary"),
            vmem_limit_bytes=vmem_limit,
        ),
        cost_estimate=cost,
    )(feats, age2d, w_rep, wab)

    # NP parallel K-partitions each hold a (B, 1) partial sum; p == 0 already carries
    # the age term and the bias, so a trivial wrapper-side sum finishes the head.
    return jnp.sum(partials, axis=0)


def _reference(features_nchw, age, l0_weight, l0_bias):
    B = features_nchw.shape[0]
    pooled = jnp.mean(features_nchw.astype(jnp.float32), axis=(2, 3)).reshape(B, -1)
    x = jnp.concatenate([pooled, age.reshape(B, 1).astype(jnp.float32)], axis=1)
    return x @ l0_weight.T + l0_bias


if __name__ == "__main__":
    key = jax.random.PRNGKey(0)
    k_feat, k_age, k_w, k_b = jax.random.split(key, 4)

    B, C, H, W = 2, 1408, 4, 4  # small synthetic forward_features output
    IN_FEATURES = C + 1         # 1408 pooled features + age (USE_AGE=True, USE_GENDER=False)

    features = jax.random.normal(k_feat, (B, C, H, W), dtype=jnp.float32)
    age = jax.random.uniform(k_age, (B,), dtype=jnp.float32, minval=0.0, maxval=100.0)

    # Deterministic nn.Linear(1409, 1)-style init: U(-1/sqrt(fan_in), 1/sqrt(fan_in)).
    bound = 1.0 / np.sqrt(IN_FEATURES)
    l0_weight = jax.random.uniform(k_w, (1, IN_FEATURES), dtype=jnp.float32,
                                   minval=-bound, maxval=bound)
    l0_bias = jax.random.uniform(k_b, (1,), dtype=jnp.float32,
                                 minval=-bound, maxval=bound)

    out = jax.block_until_ready(mymodel_head(features, age, l0_weight, l0_bias))
    ref = jax.block_until_ready(_reference(features, age, l0_weight, l0_bias))
    np.testing.assert_allclose(np.asarray(out), np.asarray(ref), rtol=1e-4, atol=1e-4)

    print("KERNEL_OK")
</pallas_src>

<mosaic_0001>
module attributes {stable_mosaic.version = 11 : i64} {
  func.func @_head_kernel(%arg0: i32, %arg1: i32, %arg2: i32, %arg3: memref<2x11264xf32, #tpu.memory_space<vmem>>, %arg4: memref<2x1xf32, #tpu.memory_space<vmem>>, %arg5: memref<1x11264xf32, #tpu.memory_space<vmem>>, %arg6: memref<2xf32, #tpu.memory_space<smem>>, %arg7: memref<1x2x1xf32, #tpu.memory_space<vmem>>) attributes {dimension_semantics = [#tpu.dimension_semantics<parallel>, #tpu.dimension_semantics<parallel>, #tpu.dimension_semantics<arbitrary>], iteration_bounds = array<i64: 2, 1, 1>, scalar_prefetch = 0 : i64, scratch_operands = 0 : i64, tpu.core_type = #tpu.core_type<tc>, window_params = [{transform_indices = @transform_0, window_bounds = array<i64: 2, 11264>}, {transform_indices = @transform_1, window_bounds = array<i64: 2, 1>}, {transform_indices = @transform_2, window_bounds = array<i64: 1, 11264>}, {transform_indices = @transform_3, window_bounds = array<i64: 2>}, {transform_indices = @transform_4, window_bounds = array<i64: 1, 2, 1>}]} {
    %c0_i32 = arith.constant 0 : i32
    %0 = arith.cmpi eq, %arg2, %c0_i32 : i32
    %1 = arith.extui %0 : i1 to i32
    %c0_i32_0 = arith.constant 0 : i32
    %2 = arith.cmpi ne, %1, %c0_i32_0 : i32
    scf.if %2 {
      %cst_13 = arith.constant 0.000000e+00 : f32
      %20 = vector.broadcast %cst_13 : f32 to vector<2x1xf32>
      %c0_14 = arith.constant 0 : index
      %c0_15 = arith.constant 0 : index
      %c0_16 = arith.constant 0 : index
      %21 = vector.load %arg7[%c0_14, %c0_15, %c0_16] : memref<1x2x1xf32, #tpu.memory_space<vmem>>, vector<1x2x1xf32>
      %22 = vector.shape_cast %21 : vector<1x2x1xf32> to vector<2x1xf32>
      %23 = vector.shape_cast %20 : vector<2x1xf32> to vector<1x2x1xf32>
      tpu.vector_store %arg7[%c0_14, %c0_15, %c0_16], %23 {strides = array<i32>} : memref<1x2x1xf32, #tpu.memory_space<vmem>>, vector<1x2x1xf32>,
    } else {
    }
    %c0 = arith.constant 0 : index
    %c0_1 = arith.constant 0 : index
    %3 = vector.load %arg3[%c0, %c0_1] : memref<2x11264xf32, #tpu.memory_space<vmem>>, vector<2x11264xf32>
    %c0_2 = arith.constant 0 : index
    %c0_3 = arith.constant 0 : index
    %c0_4 = arith.constant 0 : index
    %4 = vector.load %arg7[%c0_2, %c0_3, %c0_4] : memref<1x2x1xf32, #tpu.memory_space<vmem>>, vector<1x2x1xf32>
    %5 = vector.shape_cast %4 : vector<1x2x1xf32> to vector<2x1xf32>
    %c0_5 = arith.constant 0 : index
    %c0_6 = arith.constant 0 : index
    %6 = vector.load %arg5[%c0_5, %c0_6] : memref<1x11264xf32, #tpu.memory_space<vmem>>, vector<1x11264xf32>
    %7 = vector.broadcast %6 : vector<1x11264xf32> to vector<2x11264xf32>
    %8 = arith.mulf %3, %7 : vector<2x11264xf32>
    %cst = arith.constant dense<0.000000e+00> : vector<2xf32>
    %9 = vector.multi_reduction <add>, %8, %cst [1] : vector<2x11264xf32> to vector<2xf32>
    %10 = vector.shape_cast %9 : vector<2xf32> to vector<2x1xf32>
    %11 = arith.addf %5, %10 : vector<2x1xf32>
    %c0_7 = arith.constant 0 : index
    %c0_8 = arith.constant 0 : index
    %c0_9 = arith.constant 0 : index
    %12 = vector.load %arg7[%c0_7, %c0_8, %c0_9] : memref<1x2x1xf32, #tpu.memory_space<vmem>>, vector<1x2x1xf32>
    %13 = vector.shape_cast %12 : vector<1x2x1xf32> to vector<2x1xf32>
    %14 = vector.shape_cast %11 : vector<2x1xf32> to vector<1x2x1xf32>
    tpu.vector_store %arg7[%c0_7, %c0_8, %c0_9], %14 {strides = array<i32>} : memref<1x2x1xf32, #tpu.memory_space<vmem>>, vector<1x2x1xf32>,
    %c0_i32_10 = arith.constant 0 : i32
    %15 = arith.cmpi eq, %arg2, %c0_i32_10 : i32
    %c0_i32_11 = arith.constant 0 : i32
    %16 = arith.cmpi eq, %arg0, %c0_i32_11 : i32
    %17 = arith.andi %15, %16 : i1
    %18 = arith.extui %17 : i1 to i32
    %c0_i32_12 = arith.constant 0 : i32
    %19 = arith.cmpi ne, %18, %c0_i32_12 : i32
    scf.if %19 {
      %c0_13 = arith.constant 0 : index
      %c0_14 = arith.constant 0 : index
      %c0_15 = arith.constant 0 : index
      %20 = vector.load %arg7[%c0_13, %c0_14, %c0_15] : memref<1x2x1xf32, #tpu.memory_space<vmem>>, vector<1x2x1xf32>
      %21 = vector.shape_cast %20 : vector<1x2x1xf32> to vector<2x1xf32>
      %c0_16 = arith.constant 0 : index
      %c0_17 = arith.constant 0 : index
      %22 = vector.load %arg4[%c0_16, %c0_17] : memref<2x1xf32, #tpu.memory_space<vmem>>, vector<2x1xf32>
      %c0_18 = arith.constant 0 : index
      %23 = memref.load %arg6[%c0_18] : memref<2xf32, #tpu.memory_space<smem>>
      %24 = vector.broadcast %23 : f32 to vector<2x1xf32>
      %25 = arith.mulf %22, %24 : vector<2x1xf32>
      %c1 = arith.constant 1 : index
      %26 = memref.load %arg6[%c1] : memref<2xf32, #tpu.memory_space<smem>>
      %27 = vector.broadcast %26 : f32 to vector<2x1xf32>
      %28 = arith.addf %25, %27 : vector<2x1xf32>
      %29 = arith.addf %21, %28 : vector<2x1xf32>
      %c0_19 = arith.constant 0 : index
      %c0_20 = arith.constant 0 : index
      %c0_21 = arith.constant 0 : index
      %30 = vector.load %arg7[%c0_19, %c0_20, %c0_21] : memref<1x2x1xf32, #tpu.memory_space<vmem>>, vector<1x2x1xf32>
      %31 = vector.shape_cast %30 : vector<1x2x1xf32> to vector<2x1xf32>
      %32 = vector.shape_cast %29 : vector<2x1xf32> to vector<1x2x1xf32>
      tpu.vector_store %arg7[%c0_19, %c0_20, %c0_21], %32 {strides = array<i32>} : memref<1x2x1xf32, #tpu.memory_space<vmem>>, vector<1x2x1xf32>,
    } else {
    }
    return
  }
  func.func @transform_0(%arg0: i32, %arg1: i32, %arg2: i32) -> (i32, i32) {
    %c1_i32 = arith.constant 1 : i32
    %0 = arith.muli %arg0, %c1_i32 : i32
    %1 = arith.addi %0, %arg2 : i32
    %c0_i32 = arith.constant 0 : i32
    return %arg1, %1 : i32, i32
  }
  func.func @transform_1(%arg0: i32, %arg1: i32, %arg2: i32) -> (i32, i32) {
    %c0_i32 = arith.constant 0 : i32
    %c0_i32_0 = arith.constant 0 : i32
    return %arg1, %c0_i32 : i32, i32
  }
  func.func @transform_2(%arg0: i32, %arg1: i32, %arg2: i32) -> (i32, i32) {
    %c1_i32 = arith.constant 1 : i32
    %0 = arith.muli %arg0, %c1_i32 : i32
    %1 = arith.addi %0, %arg2 : i32
    %c0_i32 = arith.constant 0 : i32
    %c0_i32_0 = arith.constant 0 : i32
    return %c0_i32, %1 : i32, i32
  }
  func.func @transform_3(%arg0: i32, %arg1: i32, %arg2: i32) -> i32 {
    %c0_i32 = arith.constant 0 : i32
    %c0_i32_0 = arith.constant 0 : i32
    return %c0_i32 : i32
  }
  func.func @transform_4(%arg0: i32, %arg1: i32, %arg2: i32) -> (i32, i32, i32) {
    %c0_i32 = arith.constant 0 : i32
    %c0_i32_0 = arith.constant 0 : i32
    return %arg0, %arg1, %c0_i32 : i32, i32, i32
  }
}

</mosaic_0001>

<bundles_post_ra>
// kernel: tpu_custom_call.1
= control target key start
LH: loop header
LB: loop body
LE: loop exit
PB: predicated region body
PF: predicated region fallthrough
CT: control target
= control target key end

     0   :  { %9 = vsyncpa [#allocation3], 0  ;;  %s3365_s0 = inlined_call_operand.hbm [shape: f32[2,22528], index: 0, kind: input, shape index: {}]   ;;  %s3366_s1 = inlined_call_operand.vmem [shape: f32[2,1], index: 1, kind: input, shape index: {}]   ;;  %s3367_s2 = inlined_call_operand.hbm [shape: f32[1,22528], index: 2, kind: input, shape index: {}]   ;;  %s3368_s3 = inlined_call_operand.vmem [shape: f32[2], index: 3, kind: input, shape index: {}]   ;;  %s3369_s4 = inlined_call_operand.vmem [shape: f32[2,2,1], index: 4, kind: output, shape index: {}]  }
   0x1   :  { %11 = vsyncpa [#allocation3 + $0x1], 0 }
   0x2   :  { %12 = vsyncpa [#allocation6], 0 }
   0x3   :  { %14 = vsyncpa [#allocation6 + $0x1], 0 }
   0x4   :  { %15 = vsyncpa [#allocation4], 0  ;;  %s2226_s15 = smov 0   ;;  %s2228_s16 = smov 0  }
   0x5   :  { %s2230_s17 = smov 0   ;;  %s2232_s18 = smov 0  }
   0x6   :  { %s2234_s19 = smov 0   ;;  %s2236_s20 = smov 0  }
   0x7 LB: > { %s1966_s21 = sadd.s32 4294967295, %s2194_s20   ;;  %p64_p0 = scmp.ne.s32.totalorder %s2178_s16, %s2174_s15  ;;  %s2194_s20 = sphi %s2236_s20, %s21_s20   ;;  %s2190_s19 = sphi %s2234_s19, %s3534_s19   ;;  %s2186_s18 = sphi %s2232_s18, %s3533_s18   ;;  %s2182_s17 = sphi %s2230_s17, %s3532_s17   ;;  %s2178_s16 = sphi %s2228_s16, %s3531_s16   ;;  %s2174_s15 = sphi %s2226_s15, %s3530_s15  }
   0x8   : > { %p2256_p1 = scmp.eq.s32.totalorder %s1966_s21, 0  ;;  %p1968_p2 = scmp.ge.s32.totalorder %s2194_s20, 1 }
   0x9   : > { %p178_p3 = scmp.lt.s32.totalorder %s2194_s20, 3  ;;  %s198_s26 = sshll.u32 %s3368_s3, 4  ;;  %s199_s26 = int_to_ptr.vmem [resolvable:$true] %s198_s26 }
   0xa   : > { %s3407_s22 = scalar_select %p2256_p1, 1, 0 }
   0xb   : > { %p2264_p4 = por %p2256_p1, %p64_p0  ;;  %p2271_p5 = pnand %p1968_p2, %p178_p3 }
   0xc   : > { %s40_s29 = sadd.s32 1, %s2190_s19  ;;  %s51_s30 = sadd.s32 1, %s2182_s17 }
   0xd   : > { %s3408_s23 = scalar_select %p2264_p4, 1, 0 }
   0xe   : > { %s3409_s27 = scalar_select %p2271_p5, 1, 0 }
   0xf   : > { %p1996_p6 = pneg %p2271_p5  ;;  %p42_p8 = scmp.ge.s32.totalorder %s40_s29, 2 }
  0x10   : > { %s2061_s5 = scalar_lea.vmem %s199_s26, 16  ;;  %p2069_p13 = scmp.lt.s32.totalorder %s199_s26, %s199_s26 }
  0x11   : > { %p2279_p7 = pnand %p1996_p6, %p2256_p1  ;;  %p2062_p9 = scmp.ne.s32.totalorder %s199_s26, %s2061_s5 }
  0x12   : > { %p2070_p0 = scmp.lt.s32.totalorder %s2061_s5, %s2061_s5 }
  0x13   : > { %p2063_p10 = pneg %p2279_p7 }
  0x14   : > { %p2071_p2 = por %p2070_p0, %p2069_p13 }
  0x15   : > { %p2064_p11 = pnand %p2063_p10, %p2062_p9 }
  0x17   : > { %p2065_p12 = pneg %p2064_p11 }
  0x19   : > { %p2072_p3 = pnand %p2071_p2, %p2065_p12 }
  0x1b   : > { %2075 = shalt.err (!%p2072_p3)
}
  0x1c   : > { %s2196_s6 = smov [#allocation7]   ;;  %s3536_s29 = smov (%p42_p8, %s40_s29), 0 }
  0x1d   : > { %1999 = dma.vmem_to_smem (!%p2279_p7), %s199_s26, 16, %s2196_s6, [#allocation4]  }
  0x1e   : > { %p58_p6 = scmp.ne.s32.totalorder %s2182_s17, %s2178_s16  ;;  %p59_p9 = scmp.eq.s32.totalorder %s2194_s20, 0 }
  0x1f   : > { %s47_s7 = ssub.s32 %s2190_s19, %s3536_s29  ;;  %p2008_p10 = scmp.lt.s32.totalorder %s2194_s20, 2 }
  0x20   : > { %p49_p11 = scmp.eq.s32.totalorder %s47_s7, 0  ;;  %p60_p12 = por %p59_p9, %p58_p6 }
  0x21   : > { %s2298_s8 = sand.u32 1, %s2182_s17   ;;  %s1981_s9 = smul.u32 2816, %s2190_s19 }
  0x22   : > { %s2302_s10 = scalar_select %p49_p11, %s2182_s17, %s51_s30  }
  0x23   : > { %s1984_s11 = smul.u32 176, %s2298_s8  ;;  %s2308_s14 = scalar_lea.hbm %s3365_s0, %s1981_s9 }
  0x24   : > { %p2310_p7 = pnand %p2008_p10, %p60_p12  ;;  %s1985_s25 = smul.u32 88, %s2298_s8 }
  0x25   : > { %s213_s21 = scalar_lea.vmem [#allocation2], %s1984_s11  ;;  %s210_s26 = scalar_lea.sflag [#allocation3], %s2298_s8 }
  0x26   : > { %s224_s24 = sshll.u32 %s213_s21, 4  ;;  %s2076_s28 = scalar_lea.hbm %s2308_s14, 2816  ;;  %s2314_s24 = int_to_ptr.vmem [resolvable:$true] %s224_s24 }
  0x27   : > { %p2077_p8 = scmp.ne.s32.totalorder %s2308_s14, %s2076_s28  ;;  %p2078_p13 = pneg %p2310_p7 }
  0x28   : > { %s2081_s6 = scalar_lea.hbm %s3365_s0, 5632  ;;  %p2082_p3 = scmp.lt.u32.totalorder %s2308_s14, %s3365_s0 }
  0x29   : > { %p2079_p0 = pnand %p2078_p13, %p2077_p8  ;;  %p2083_p6 = scmp.lt.u32.totalorder %s2081_s6, %s2076_s28 }
  0x2a   : > { %p2085_p10 = scmp.lt.u32.totalorder %s2076_s28, %s2308_s14 }
  0x2b   : > { %p2080_p2 = pneg %p2079_p0  ;;  %p2084_p9 = por %p2083_p6, %p2082_p3 }
  0x2d   : > { %p2086_p11 = por %p2085_p10, %p2084_p9 }
  0x2f   : > { %p2087_p12 = pnand %p2086_p11, %p2080_p2 }
  0x31   : > { %2090 = shalt.err (!%p2087_p12)
}
  0x32   : > { %s2091_s11 = scalar_lea.vmem %s2314_s24, 2816  ;;  %s2197_s12 = smov [#allocation2]  }
  0x33   : > { %p2092_p8 = scmp.ne.s32.totalorder %s2314_s24, %s2091_s11  ;;  %s2096_s13 = sshll.u32 %s2197_s12, 4  ;;  %s2097_s13 = int_to_ptr.vmem [resolvable:$false] %s2096_s13 }
  0x34   : > { %s2098_s21 = scalar_lea.vmem %s2097_s13, 5632  ;;  %p2099_p4 = scmp.lt.s32.totalorder %s2314_s24, %s2097_s13 }
  0x35   : > { %p2094_p0 = pnand %p2092_p8, %p2078_p13  ;;  %p2100_p3 = scmp.lt.s32.totalorder %s2098_s21, %s2091_s11 }
  0x37   : > { %p2095_p1 = pneg %p2094_p0  ;;  %p2101_p6 = por %p2100_p3, %p2099_p4 }
  0x39   : > { %p2102_p9 = pnand %p2101_p6, %p2095_p1 }
  0x3b   : > { %2105 = shalt.err (!%p2102_p9)
}
  0x3c   : > { %2003 = dma.hbm_to_vmem [thread:$0]  (!%p2310_p7), %s2308_s14, 2816, %s2314_s24, %s210_s26  }
  0x3d   : > { %s1982_s28 = smul.u32 1408, %s2190_s19  ;;  %s235_s30 = scalar_lea.vmem [#allocation5], %s1985_s25 }
  0x3e   : > { %s244_s5 = sshll.u32 %s235_s30, 4  ;;  %s232_s11 = scalar_lea.sflag [#allocation6], %s2298_s8  ;;  %s245_s5 = int_to_ptr.vmem [resolvable:$true] %s244_s5 }
  0x3f   : > { %s2349_s9 = scalar_lea.hbm %s3367_s2, %s1982_s28  ;;  %s2111_s25 = scalar_lea.hbm %s3367_s2, 2816 }
  0x40   : > { %s2106_s12 = scalar_lea.hbm %s2349_s9, 1408  ;;  %p2112_p10 = scmp.lt.u32.totalorder %s2349_s9, %s3367_s2 }
  0x41   : > { %p2107_p1 = scmp.ne.s32.totalorder %s2349_s9, %s2106_s12  ;;  %p2113_p11 = scmp.lt.u32.totalorder %s2111_s25, %s2106_s12 }
  0x42   : > { %p2115_p8 = scmp.lt.u32.totalorder %s2106_s12, %s2349_s9 }
  0x43   : > { %p2109_p4 = pnand %p2107_p1, %p2078_p13  ;;  %p2114_p12 = por %p2113_p11, %p2112_p10 }
  0x45   : > { %p2110_p2 = pneg %p2109_p4  ;;  %p2116_p0 = por %p2115_p8, %p2114_p12 }
  0x47   : > { %p2117_p3 = pnand %p2116_p0, %p2110_p2 }
  0x49   : > { %2120 = shalt.err (!%p2117_p3)
}
  0x4a   : > { %s2121_s8 = scalar_lea.vmem %s245_s5, 1408  ;;  %s2198_s21 = smov [#allocation5]  }
  0x4b   : > { %p2122_p6 = scmp.ne.s32.totalorder %s245_s5, %s2121_s8  ;;  %s2126_s28 = sshll.u32 %s2198_s21, 4  ;;  %s2127_s28 = int_to_ptr.vmem [resolvable:$false] %s2126_s28 }
  0x4c   : > { %s2128_s30 = scalar_lea.vmem %s2127_s28, 2816  ;;  %p2129_p4 = scmp.lt.s32.totalorder %s245_s5, %s2127_s28 }
  0x4d   : > { %p2124_p9 = pnand %p2122_p6, %p2078_p13  ;;  %p2130_p5 = scmp.lt.s32.totalorder %s2128_s30, %s2121_s8 }
  0x4f   : > { %p2125_p1 = pneg %p2124_p9  ;;  %p2131_p10 = por %p2130_p5, %p2129_p4 }
  0x51   : > { %p2132_p11 = pnand %p2131_p10, %p2125_p1 }
  0x53   : > { %2135 = shalt.err (!%p2132_p11)
}
  0x54   : > { %2006 = dma.hbm_to_vmem [thread:$0]  (!%p2310_p7), %s2349_s9, 1408, %s245_s5, %s232_s11  }
  0x55   : > { %p3412_p2 = scmp.ne.s32.totalorder %s3409_s27, 0 }
  0x57   : > { %253 = sbr.rel (%p3412_p2) target bundleno = 513 (0x201), region = 36 }
  0x5e   : > { %s255_s6 = sand.u32 1, %s2178_s16   ;;  %p3413_p13 = scmp.ne.s32.totalorder %s3408_s23, 0 }
  0x5f   : > { %s1986_s7 = smul.u32 176, %s255_s6  ;;  %s256_s12 = scalar_lea.sflag [#allocation3], %s255_s6 }
  0x61   : > { %s2374_s14 = scalar_lea.vmem [#allocation2], %s1986_s7 }
  0x62   : > { %2161 = dma.done.wait (%p3413_p13), %s256_s12, 2816  }
  0x63   : > { %2163 = vsyncadd (%p3413_p13), %s256_s12, 4294964480  ;;  %s1987_s24 = smul.u32 88, %s255_s6  ;;  %s265_s15 = scalar_lea.sflag [#allocation6], %s255_s6 }
  0x65   : > { %s2380_s25 = scalar_lea.vmem [#allocation5], %s1987_s24 }
  0x66   : > { %2165 = dma.done.wait (%p3413_p13), %s265_s15, 1408  }
  0x67   : > { %2167 = vsyncadd (%p3413_p13), %s265_s15, 4294965888  ;;  %p3414_p5 = scmp.ne.s32.totalorder %s3407_s22, 0 }
  0x69   : > { %2169 = dma.done.wait (%p3414_p5), [#allocation4], 16  }
  0x6a   : > { %2171 = vsyncadd (%p3414_p5), [#allocation4], 4294967280 }
  0x6b   : > { %277 = sfence }
  0x6c   : > { %p317_p7 = scmp.lt.s32.totalorder %s2186_s18, 1  ;;  %vm328_vm0 = vcmask 1024   ;;  %v2199_v0 = vmov 0.0   ;;  %v375_v1 = vlaneseq  ;;  %v2200_v3 = vmov 1983009808   ;;  %v2402_v7 = vld [vmem:[%s2380_s25] sm:$0xff] }
  0x6d   : > { %v730_v4 = vunpack.c.l.s4 %v2200_v3  ;;  %3416 = vst [vmem:[#allocation12_spill] sm:$0xff] %v2402_v7  ;;  %v2419_v15 = vld [vmem:[%s2380_s25 + $0x8] sm:$0xff]  ;;  %v2426_v18 = vld [vmem:[%s2380_s25 + $0x10] sm:$0xff]  ;;  %v2445_v27 = vld [vmem:[%s2380_s25 + $0x20] sm:$0xff]  ;;  %vm1629_vm1 = vcmask 1041408   ;;  %p1810_p12 = scmp.eq.s32.totalorder %s2186_s18, 0 }
  0x6e   : > { %s318_s27 = scalar_select %p317_p7, %s2186_s18, 1  ;;  %v376_v2 = vshrl.u32 %v375_v1, 7  ;;  %3422 = vst [vmem:[#allocation18_spill] sm:$0xff] %v2419_v15  ;;  %3424 = vst [vmem:[#allocation20_spill] sm:$0xff] %v2426_v18  ;;  %v2464_v36 = vld [vmem:[%s2380_s25 + $0x28] sm:$0xff]  ;;  %v2483_v45 = vld [vmem:[%s2380_s25 + $0x30] sm:$0xff] }
  0x6f   : > { %v731_v6 = vunpack.c.0.s8 %v730_v4  ;;  %v2502_v54 = vld [vmem:[%s2380_s25 + $0x38] sm:$0xff]  ;;  %v2521_v63 = vld [vmem:[%s2380_s25 + $0x40] sm:$0xff]  ;;  %v2540_v42 = vld [vmem:[%s2380_s25 + $0x48] sm:$0xff]  ;;  %s1817_s22 = sld [smem:[#allocation7]] (%p1810_p12)  ;;  %s1978_s23 = sld [smem:[#allocation7 + $0x1]] (%p1810_p12) }
  0x70   : > { %s1976_s5 = sshll.u32 %s318_s27, 1  ;;  %v2399_v5 = vsub.s32 0, %v376_v2  ;;  %v2404_v8 = vsub.s32 1, %v376_v2  ;;  %v2406_v9 = vsub.s32 2, %v376_v2  ;;  %v2408_v10 = vsub.s32 3, %v376_v2  ;;  %3425 = vst [vmem:[#allocation21_spill] sm:$0xff] %v2521_v63 }
  0x71   : > { %s2395_s26 = scalar_lea.vmem %s3369_s4, %s1976_s5  ;;  %v2410_v11 = vsub.s32 4, %v376_v2  ;;  %v2412_v12 = vsub.s32 5, %v376_v2  ;;  %v2414_v13 = vsub.s32 6, %v376_v2  ;;  %v2416_v14 = vsub.s32 7, %v376_v2  ;;  %3426 = vst [vmem:[#allocation22_spill] sm:$0xff] %v2540_v42  ;;  %v2559_v33 = vld [vmem:[%s2380_s25 + $0x50] sm:$0xff] }
  0x72   : > { %329 = vst.msk [vmem:[%s2395_s26] sm:$0x3] %vm328_vm0, %v2199_v0  ;;  %3415 = vst [vmem:[#allocation11_spill] sm:$0xff] %v2399_v5  ;;  %v2423_v17 = vsub.s32 %v731_v6, %v376_v2  ;;  %v506_v44 = vrot.slane %v2445_v27, %v2399_v5  ;;  %v510_v46 = vrot.slane %v2445_v27, %v2404_v8 }
  0x73   : > { %3417 = vst [vmem:[#allocation13_spill] sm:$0xff] %v2406_v9  ;;  %3418 = vst [vmem:[#allocation14_spill] sm:$0xff] %v2410_v11  ;;  %v514_v47 = vrot.slane %v2445_v27, %v2406_v9  ;;  %v518_v48 = vrot.slane %v2445_v27, %v2408_v10  ;;  %v522_v49 = vrot.slane %v2445_v27, %v2410_v11 }
  0x74   : > { %3419 = vst [vmem:[#allocation15_spill] sm:$0xff] %v2412_v12  ;;  %3420 = vst [vmem:[#allocation16_spill] sm:$0xff] %v2414_v13  ;;  %v526_v50 = vrot.slane %v2445_v27, %v2412_v12  ;;  %v530_v51 = vrot.slane %v2445_v27, %v2414_v13  ;;  %v534_v52 = vrot.slane %v2445_v27, %v2416_v14 }
  0x75   : > { %3421 = vst [vmem:[#allocation17_spill] sm:$0xff] %v2416_v14  ;;  %3423 = vst [vmem:[#allocation19_spill] sm:$0xff] %v2423_v17  ;;  %v538_v53 = vrot.slane %v2464_v36, %v2399_v5  ;;  %v542_v55 = vrot.slane %v2464_v36, %v2404_v8  ;;  %v546_v56 = vrot.slane %v2464_v36, %v2406_v9 }
  0x76   : > { %v550_v57 = vrot.slane %v2464_v36, %v2408_v10  ;;  %v554_v58 = vrot.slane %v2464_v36, %v2410_v11  ;;  %v558_v59 = vrot.slane %v2464_v36, %v2412_v12  ;;  %v562_v60 = vrot.slane %v2464_v36, %v2414_v13 }
  0x77   : > { %v566_v61 = vrot.slane %v2464_v36, %v2416_v14  ;;  %v570_v62 = vrot.slane %v2483_v45, %v2399_v5  ;;  %v574_v0 = vrot.slane %v2483_v45, %v2404_v8  ;;  %v578_v1 = vrot.slane %v2483_v45, %v2406_v9 }
  0x78   : > { %v582_v2 = vrot.slane %v2483_v45, %v2408_v10  ;;  %v586_v3 = vrot.slane %v2483_v45, %v2410_v11  ;;  %v590_v4 = vrot.slane %v2483_v45, %v2412_v12  ;;  %v594_v6 = vrot.slane %v2483_v45, %v2414_v13 }
  0x79   : > { %v598_v27 = vrot.slane %v2483_v45, %v2416_v14  ;;  %v602_v36 = vrot.slane %v2502_v54, %v2399_v5  ;;  %v606_v43 = vrot.slane %v2502_v54, %v2404_v8  ;;  %v610_v40 = vrot.slane %v2502_v54, %v2406_v9 }
  0x7a   : > { %v614_v41 = vrot.slane %v2502_v54, %v2408_v10  ;;  %v618_v38 = vrot.slane %v2502_v54, %v2410_v11  ;;  %v622_v45 = vrot.slane %v2502_v54, %v2412_v12  ;;  %v626_v39 = vrot.slane %v2502_v54, %v2414_v13 }
  0x7b   : > { %v630_v35 = vrot.slane %v2502_v54, %v2416_v14  ;;  %v634_v37 = vrot.slane %v2521_v63, %v2399_v5  ;;  %v638_v34 = vrot.slane %v2521_v63, %v2404_v8  ;;  %v642_v31 = vrot.slane %v2521_v63, %v2406_v9 }
  0x7c   : > { %v646_v32 = vrot.slane %v2521_v63, %v2408_v10  ;;  %v654_v54 = vrot.slane %v2521_v63, %v2412_v12  ;;  %v658_v30 = vrot.slane %v2521_v63, %v2414_v13  ;;  %v662_v26 = vrot.slane %v2521_v63, %v2416_v14 }
  0x7d   : > { %v670_v24 = vrot.slane %v2540_v42, %v2404_v8  ;;  %v674_v25 = vrot.slane %v2540_v42, %v2406_v9  ;;  %v678_v22 = vrot.slane %v2540_v42, %v2408_v10  ;;  %v686_v20 = vrot.slane %v2540_v42, %v2412_v12 }
  0x7e   : > { %v690_v21 = vrot.slane %v2540_v42, %v2414_v13  ;;  %v694_v28 = vrot.slane %v2540_v42, %v2416_v14  ;;  %v863_v18 = vcombine.low %v506_v44, %v510_v46  ;;  %v864_v29 = vcombine.low %v514_v47, %v518_v48  ;;  %v3428_v46 = vld [vmem:[#allocation11_spill] sm:$0xff] }
  0x7f   : > { %v880_v19 = vcombine.low %v522_v49, %v526_v50  ;;  %v881_v9 = vcombine.low %v530_v51, %v534_v52  ;;  %v3427_v44 = vrot.slane %v2402_v7, %v2404_v8  ;;  %v3429_v15 = vrot.slane %v2402_v7, %v3428_v46 }
  0x80   : > { %v871_v5 = vrot.slane %v863_v18, %v2423_v17  ;;  %v878_v63 = vrot.slane %v864_v29, %v2423_v17  ;;  %v897_v12 = vcombine.low %v538_v53, %v542_v55  ;;  %v898_v42 = vcombine.low %v546_v56, %v550_v57 }
  0x81   : > { %v2614_v23 = vcombine.low %v3429_v15, %v3427_v44  ;;  %v888_v47 = vrot.slane %v880_v19, %v2423_v17  ;;  %v895_v48 = vrot.slane %v881_v9, %v2423_v17  ;;  %v914_v16 = vcombine.low %v554_v58, %v558_v59 }
  0x82   : > { %v915_v18 = vcombine.low %v562_v60, %v566_v61  ;;  %v2619_v49 = vcombine.low %v871_v5, %v878_v63  ;;  %v905_v50 = vrot.slane %v897_v12, %v2423_v17  ;;  %v912_v51 = vrot.slane %v898_v42, %v2423_v17 }
  0x83   : > { %v931_v52 = vcombine.low %v570_v62, %v574_v0  ;;  %v2623_v7 = vcombine.low %v888_v47, %v895_v48  ;;  %v922_v15 = vrot.slane %v914_v16, %v2423_v17  ;;  %v932_v53 = vcombine.low %v578_v1, %v582_v2 }
  0x84   : > { %v929_v29 = vrot.slane %v915_v18, %v2423_v17  ;;  %v2627_v55 = vcombine.low %v905_v50, %v912_v51  ;;  %v948_v19 = vcombine.low %v586_v3, %v590_v4  ;;  %v949_v56 = vcombine.low %v594_v6, %v598_v27 }
  0x85   : > { %v939_v9 = vrot.slane %v931_v52, %v2423_v17  ;;  %v946_v12 = vrot.slane %v932_v53, %v2423_v17  ;;  %v965_v57 = vcombine.low %v602_v36, %v606_v43  ;;  %v966_v42 = vcombine.low %v610_v40, %v614_v41  ;;  %v3440_v53 = vld [vmem:[#allocation15_spill] sm:$0xff] }
  0x86   : > { %v2630_v5 = vcombine.low %v922_v15, %v929_v29  ;;  %v956_v58 = vrot.slane %v948_v19, %v2423_v17  ;;  %v963_v59 = vrot.slane %v949_v56, %v2423_v17  ;;  %v982_v16 = vcombine.low %v618_v38, %v622_v45  ;;  %v3430_v38 = vld [vmem:[#allocation21_spill] sm:$0xff] }
  0x87   : > { %v983_v60 = vcombine.low %v626_v39, %v630_v35  ;;  %v2635_v61 = vcombine.low %v939_v9, %v946_v12  ;;  %v973_v62 = vrot.slane %v965_v57, %v2423_v17  ;;  %v980_v63 = vrot.slane %v966_v42, %v2423_v17 }
  0x88   : > { %v999_v0 = vcombine.low %v634_v37, %v638_v34  ;;  %v2639_v1 = vcombine.low %v956_v58, %v963_v59  ;;  %v990_v2 = vrot.slane %v982_v16, %v2423_v17  ;;  %v1000_v40 = vcombine.low %v642_v31, %v646_v32  ;;  %v3432_v37 = vld [vmem:[#allocation22_spill] sm:$0xff]  ;;  %v3445_v58 = vld [vmem:[#allocation12_spill] sm:$0xff] }
  0x89   : > { %v997_v43 = vrot.slane %v983_v60, %v2423_v17  ;;  %v2643_v41 = vcombine.low %v973_v62, %v980_v63  ;;  %v3431_v35 = vrot.slane %v3430_v38, %v2410_v11  ;;  %v1017_v4 = vcombine.low %v658_v30, %v662_v26  ;;  %v3452_v38 = vld [vmem:[#allocation18_spill] sm:$0xff] }
  0x8a   : > { %v1007_v3 = vrot.slane %v999_v0, %v2423_v17  ;;  %v1014_v34 = vrot.slane %v1000_v40, %v2423_v17  ;;  %v3433_v27 = vrot.slane %v3432_v37, %v3428_v46  ;;  %v1034_v45 = vcombine.low %v674_v25, %v678_v22 }
  0x8b   : > { %v1016_v39 = vcombine.low %v3431_v35, %v654_v54  ;;  %v2649_v6 = vcombine.low %v990_v2, %v997_v43  ;;  %v1031_v32 = vrot.slane %v1017_v4, %v2423_v17  ;;  %v3434_v44 = vrot.slane %v3432_v37, %v2410_v11 }
  0x8c   : > { %v1033_v36 = vcombine.low %v3433_v27, %v670_v24  ;;  %v1051_v48 = vcombine.low %v690_v21, %v694_v28  ;;  %v2660_v54 = vcombine.low %v1007_v3, %v1014_v34  ;;  %v1048_v30 = vrot.slane %v1034_v45, %v2423_v17  ;;  %v3438_v28 = vld [vmem:[#allocation13_spill] sm:$0xff] }
  0x8d   : > { %v1024_v31 = vrot.slane %v1016_v39, %v2423_v17  ;;  %v1050_v47 = vcombine.low %v3434_v44, %v686_v20  ;;  %v3435_v18 = vrot.slane %v2559_v33, %v2404_v8  ;;  %v3436_v22 = vrot.slane %v2559_v33, %v3428_v46 }
  0x8e   : > { %v1041_v26 = vrot.slane %v1033_v36, %v2423_v17  ;;  %v1065_v20 = vrot.slane %v1051_v48, %v2423_v17  ;;  %v3437_v21 = vrot.slane %v2559_v33, %v2408_v10  ;;  %v3439_v51 = vrot.slane %v2559_v33, %v3438_v28 }
  0x8f   : > { %v1067_v24 = vcombine.low %v3436_v22, %v3435_v18  ;;  %v2670_v25 = vcombine.low %v1024_v31, %v1031_v32  ;;  %v1058_v50 = vrot.slane %v1050_v47, %v2423_v17  ;;  %v3441_v9 = vrot.slane %v2559_v33, %v3440_v53  ;;  %v3461_v18 = vld [vmem:[#allocation20_spill] sm:$0xff] }
  0x90   : > { %v1068_v52 = vcombine.low %v3439_v51, %v3437_v21  ;;  %v2680_v15 = vcombine.low %v1041_v26, %v1048_v30  ;;  %v3442_v19 = vrot.slane %v2559_v33, %v2410_v11  ;;  %v3443_v12 = vrot.slane %v2559_v33, %v2416_v14 }
  0x91   : > { %v1075_v29 = vrot.slane %v1067_v24, %v2423_v17  ;;  %v3444_v57 = vrot.slane %v2559_v33, %v2414_v13  ;;  %v3446_v59 = vrot.slane %v3445_v58, %v2408_v10  ;;  %v3447_v16 = vrot.slane %v3445_v58, %v3438_v28 }
  0x92   : > { %v1084_v56 = vcombine.low %v3442_v19, %v3441_v9  ;;  %v3448_v62 = vrot.slane %v3445_v58, %v3440_v53  ;;  %v3449_v63 = vrot.slane %v3445_v58, %v2410_v11  ;;  %v2707_v2 = vcombine.low %v1058_v50, %v1065_v20  ;;  %v2762_v19 = vld [vmem:[%s2380_s25 + $0x18] sm:$0xff] }
  0x93   : > { %v1085_v42 = vcombine.low %v3444_v57, %v3443_v12  ;;  %v728_v60 = vcombine.low %v3447_v16, %v3446_v59  ;;  %v1082_v33 = vrot.slane %v1068_v52, %v2423_v17  ;;  %v3450_v43 = vrot.slane %v3445_v58, %v2416_v14  ;;  %3466 = vst [vmem:[#allocation11_spill] sm:$0xff] %v2762_v19 }
  0x94   : > { %v744_v0 = vcombine.low %v3449_v63, %v3448_v62  ;;  %v3451_v40 = vrot.slane %v3445_v58, %v2414_v13  ;;  %v3453_v35 = vrot.slane %v3452_v38, %v2404_v8  ;;  %v3454_v39 = vrot.slane %v3452_v38, %v3428_v46 }
  0x95   : > { %v1092_v34 = vrot.slane %v1084_v56, %v2423_v17  ;;  %v1099_v37 = vrot.slane %v1085_v42, %v2423_v17  ;;  %v3455_v27 = vrot.slane %v3452_v38, %v2408_v10  ;;  %v3456_v36 = vrot.slane %v3452_v38, %v3438_v28 }
  0x96   : > { %v745_v3 = vcombine.low %v3451_v40, %v3450_v43  ;;  %v761_v4 = vcombine.low %v3454_v39, %v3453_v35  ;;  %v3457_v31 = vrot.slane %v3452_v38, %v3440_v53  ;;  %v3458_v32 = vrot.slane %v3452_v38, %v2410_v11  ;;  %v338_v35 = vld [vmem:[%s2374_s14 + $0x40] sm:$0xff] }
  0x97   : > { %v762_v45 = vcombine.low %v3456_v36, %v3455_v27  ;;  %v3459_v47 = vrot.slane %v3452_v38, %v2416_v14  ;;  %v3460_v48 = vrot.slane %v3452_v38, %v2414_v13  ;;  %v2742_v30 = vcombine.low %v1075_v29, %v1082_v33  ;;  %v331_v27 = vld [vmem:[%s2374_s14 + $0x8] sm:$0xff] }
  0x98   : > { %v778_v44 = vcombine.low %v3458_v32, %v3457_v31  ;;  %v3462_v22 = vrot.slane %v3461_v18, %v2404_v8  ;;  %v3463_v24 = vrot.slane %v3461_v18, %v3428_v46  ;;  %v3464_v20 = vrot.slane %v3461_v18, %v2408_v10  ;;  %v332_v31 = vld [vmem:[%s2374_s14 + $0x10] sm:$0xff]  ;;  %v333_v32 = vld [vmem:[%s2374_s14 + $0x18] sm:$0xff] }
  0x99   : > { %v779_v26 = vcombine.low %v3460_v48, %v3459_v47  ;;  %v3465_v21 = vrot.slane %v3461_v18, %v3438_v28  ;;  %v2756_v52 = vcombine.low %v1092_v34, %v1099_v37  ;;  %v735_v29 = vrot.slane %v2614_v23, %v2423_v17  ;;  %v334_v47 = vld [vmem:[%s2374_s14 + $0x20] sm:$0xff]  ;;  %v341_v48 = vld [vmem:[%s2374_s14 + $0x58] sm:$0xff] }
  0x9a   : > { %v795_v50 = vcombine.low %v3463_v24, %v3462_v22  ;;  %v742_v9 = vrot.slane %v728_v60, %v2423_v17  ;;  %v752_v56 = vrot.slane %v744_v0, %v2423_v17  ;;  %v759_v12 = vrot.slane %v745_v3, %v2423_v17  ;;  %v343_v24 = vld [vmem:[%s2374_s14 + $0x68] sm:$0xff] }
  0x9b   : > { %v796_v51 = vcombine.low %v3465_v21, %v3464_v20  ;;  %v3467_v57 = vrot.slane %v3461_v18, %v3440_v53  ;;  %v3468_v42 = vrot.slane %v3461_v18, %v2410_v11  ;;  %v3469_v59 = vrot.slane %v3461_v18, %v2416_v14  ;;  %v345_v20 = vld [vmem:[%s2374_s14 + $0x78] sm:$0xff] }
  0x9c   : > { %v3470_v23 = vrot.slane %v3461_v18, %v2414_v13  ;;  %v769_v60 = vrot.slane %v761_v4, %v2423_v17  ;;  %v776_v62 = vrot.slane %v762_v45, %v2423_v17  ;;  %v786_v63 = vrot.slane %v778_v44, %v2423_v17  ;;  %v340_v44 = vld [vmem:[%s2374_s14 + $0x50] sm:$0xff] }
  0x9d   : > { %v812_v58 = vcombine.low %v3468_v42, %v3467_v57  ;;  %v793_v0 = vrot.slane %v779_v26, %v2423_v17  ;;  %v803_v33 = vrot.slane %v795_v50, %v2423_v17  ;;  %v810_v43 = vrot.slane %v796_v51, %v2423_v17  ;;  %v342_v26 = vld [vmem:[%s2374_s14 + $0x60] sm:$0xff]  ;;  %v344_v50 = vld [vmem:[%s2374_s14 + $0x70] sm:$0xff] }
  0x9e   : > { %v813_v16 = vcombine.low %v3470_v23, %v3469_v59  ;;  %v474_v40 = vrot.slane %v2762_v19, %v3428_v46  ;;  %v478_v3 = vrot.slane %v2762_v19, %v2404_v8  ;;  %v482_v38 = vrot.slane %v2762_v19, %v3438_v28  ;;  %v330_v46 = vld [vmem:[%s2374_s14] sm:$0xff]  ;;  %v339_v8 = vld [vmem:[%s2374_s14 + $0x48] sm:$0xff]  ;;  %v348_v59 = vld [vmem:[%s2374_s14 + $0x90] sm:$0xff] }
  0x9f   : > { %v486_v39 = vrot.slane %v2762_v19, %v2408_v10  ;;  %v743_v4 = vcombine.low %v735_v29, %v742_v9  ;;  %v820_v34 = vrot.slane %v812_v58, %v2423_v17  ;;  %v760_v36 = vcombine.low %v752_v56, %v759_v12  ;;  %v346_v56 = vld [vmem:[%s2374_s14 + $0x80] sm:$0xff]  ;;  %v347_v58 = vld [vmem:[%s2374_s14 + $0x88] sm:$0xff] }
  0xa0   : > { %v827_v37 = vrot.slane %v813_v16, %v2423_v17  ;;  %v777_v28 = vcombine.low %v769_v60, %v776_v62  ;;  %v794_v45 = vcombine.low %v786_v63, %v793_v0  ;;  %v811_v10 = vcombine.low %v803_v33, %v810_v43  ;;  %v349_v63 = vld [vmem:[%s2374_s14 + $0x98] sm:$0xff] }
  0xa1   : > { %v2804_v18 = vcombine.low %v474_v40, %v478_v3  ;;  %v1131_v22 = vmul.f32 %v2619_v49, %v338_v35  ;;  %v2812_v51 = vcombine.low %v482_v38, %v486_v39  ;;  %v1123_v29 = vmul.f32 %v743_v4, %v330_v46 }
  0xa2   : > { %v2810_v21 = vcombine.low %v820_v34, %v827_v37  ;;  %v1132_v9 = vmul.f32 %v2623_v7, %v339_v8  ;;  %v1124_v12 = vmul.f32 %v760_v36, %v331_v27  ;;  %v2816_v57 = vmul.f32 %v777_v28, %v332_v31  ;;  %v350_v7 = vld [vmem:[%s2374_s14 + $0xa0] sm:$0xff] }
  0xa3   : > { %3471 = vst [vmem:[#allocation21_spill] sm:$0xff] %v2804_v18  ;;  %3473 = vst [vmem:[#allocation13_spill] sm:$0xff] %v2812_v51  ;;  %v2818_v42 = vmul.f32 %v794_v45, %v333_v32  ;;  %v1133_v49 = vmul.f32 %v2627_v55, %v340_v44  ;;  %v2823_v23 = vmul.f32 %v811_v10, %v334_v47  ;;  %v351_v55 = vld [vmem:[%s2374_s14 + $0xa8] sm:$0xff] }
  0xa4   : > { %3472 = vst [vmem:[#allocation22_spill] sm:$0xff] %v2810_v21  ;;  %v1134_v16 = vmul.f32 %v2630_v5, %v341_v48  ;;  %v1135_v60 = vmul.f32 %v2635_v61, %v342_v26  ;;  %v1303_v62 = vcombine.high %v1131_v22, %v1131_v22  ;;  %v1136_v0 = vmul.f32 %v2639_v1, %v343_v24 }
  0xa5   : > { %3474 = vst [vmem:[#allocation12_spill] sm:$0xff] %v2823_v23  ;;  %v1137_v33 = vmul.f32 %v2643_v41, %v344_v50  ;;  %v1138_v43 = vmul.f32 %v2649_v6, %v345_v20  ;;  %v2833_v40 = vrot.slane %v1131_v22, %v2423_v17  ;;  %v1139_v3 = vmul.f32 %v2660_v54, %v346_v56 }
  0xa6   : > { %v2838_v38 = vrot.slane %v1303_v62, %v2423_v17  ;;  %v1320_v5 = vcombine.high %v1132_v9, %v1132_v9  ;;  %v2841_v61 = vrot.slane %v1132_v9, %v2423_v17  ;;  %v1140_v35 = vmul.f32 %v2670_v25, %v347_v58 }
  0xa7   : > { %3475 = vst [vmem:[#allocation18_spill] sm:$0xff] %v2833_v40  ;;  %v1141_v1 = vmul.f32 %v2680_v15, %v348_v59  ;;  %v1337_v41 = vcombine.high %v1133_v49, %v1133_v49  ;;  %v2846_v6 = vrot.slane %v1133_v49, %v2423_v17  ;;  %v1142_v39 = vmul.f32 %v2707_v2, %v349_v63 }
  0xa8   : > { %v1143_v4 = vmul.f32 %v2742_v30, %v350_v7  ;;  %v2851_v54 = vrot.slane %v1320_v5, %v2423_v17  ;;  %v1354_v34 = vcombine.high %v1134_v16, %v1134_v16  ;;  %v1144_v37 = vmul.f32 %v2756_v52, %v351_v55 }
  0xa9   : > { %v2855_v46 = vrot.slane %v1337_v41, %v2423_v17  ;;  %v2858_v25 = vrot.slane %v1134_v16, %v2423_v17  ;;  %v1371_v15 = vcombine.high %v1135_v60, %v1135_v60  ;;  %v1167_v27 = vcombine.high %v1123_v29, %v1123_v29 }
  0xaa   : > { %v2861_v8 = vrot.slane %v1354_v34, %v2423_v17  ;;  %v2864_v2 = vrot.slane %v1135_v60, %v2423_v17  ;;  %v1388_v30 = vcombine.high %v1136_v0, %v1136_v0  ;;  %v1174_v36 = vrot.slane %v1123_v29, %v2423_v17 }
  0xab   : > { %v1184_v28 = vcombine.high %v1124_v12, %v1124_v12  ;;  %v2868_v52 = vrot.slane %v1371_v15, %v2423_v17  ;;  %v2871_v45 = vrot.slane %v1136_v0, %v2423_v17  ;;  %v2874_v31 = vrot.slane %v1124_v12, %v2423_v17 }
  0xac   : > { %v1201_v32 = vcombine.high %v2816_v57, %v2816_v57  ;;  %v2879_v44 = vrot.slane %v1388_v30, %v2423_v17  ;;  %v1405_v10 = vcombine.high %v1137_v33, %v1137_v33  ;;  %v2883_v47 = vrot.slane %v2816_v57, %v2423_v17 }
  0xad   : > { %v1218_v48 = vcombine.high %v2818_v42, %v2818_v42  ;;  %v2888_v26 = vrot.slane %v1137_v33, %v2423_v17  ;;  %v1422_v22 = vcombine.high %v1138_v43, %v1138_v43  ;;  %v2892_v24 = vrot.slane %v2818_v42, %v2423_v17 }
  0xae   : > { %v2895_v50 = vrot.slane %v1405_v10, %v2423_v17  ;;  %v2898_v20 = vrot.slane %v1138_v43, %v2423_v17  ;;  %v1439_v29 = vcombine.high %v1139_v3, %v1139_v3  ;;  %v1181_v9 = vrot.slane %v1167_v27, %v2423_v17 }
  0xaf   : > { %v2902_v56 = vrot.slane %v1422_v22, %v2423_v17  ;;  %v2905_v12 = vrot.slane %v1139_v3, %v2423_v17  ;;  %v1456_v57 = vcombine.high %v1140_v35, %v1140_v35  ;;  %v1182_v49 = vcombine.high %v1174_v36, %v1174_v36 }
  0xb0   : > { %v1198_v42 = vrot.slane %v1184_v28, %v2423_v17  ;;  %v2909_v58 = vrot.slane %v1439_v29, %v2423_v17  ;;  %v2912_v59 = vrot.slane %v1140_v35, %v2423_v17  ;;  %v1199_v16 = vcombine.high %v2874_v31, %v2874_v31 }
  0xb1   : > { %v1215_v60 = vrot.slane %v1201_v32, %v2423_v17  ;;  %v2918_v62 = vrot.slane %v1456_v57, %v2423_v17  ;;  %v1473_v63 = vcombine.high %v1141_v1, %v1141_v1  ;;  %v1216_v7 = vcombine.high %v2883_v47, %v2883_v47 }
  0xb2   : > { %v2923_v0 = vrot.slane %v1218_v48, %v2423_v17  ;;  %v2926_v33 = vrot.slane %v1141_v1, %v2423_v17  ;;  %v1490_v43 = vcombine.high %v1142_v39, %v1142_v39  ;;  %v2934_v5 = vrot.slane %v1142_v39, %v2423_v17 }
  0xb3   : > { %v2931_v3 = vrot.slane %v1473_v63, %v2423_v17  ;;  %v1507_v35 = vcombine.high %v1143_v4, %v1143_v4  ;;  %v1183_v41 = vcombine.high %v1181_v9, %v1181_v9  ;;  %v2940_v15 = vrot.slane %v1143_v4, %v2423_v17 }
  0xb4   : > { %3476 = vst [vmem:[#allocation20_spill] sm:$0xff] %v2923_v0  ;;  %v2937_v34 = vrot.slane %v1490_v43, %v2423_v17  ;;  %v1524_v1 = vcombine.high %v1144_v37, %v1144_v37  ;;  %v1200_v27 = vcombine.high %v1198_v42, %v1198_v42  ;;  %v2948_v32 = vrot.slane %v1144_v37, %v2423_v17 }
  0xb5   : > { %3478 = vst [vmem:[#allocation24_spill] sm:$0xff] %v2940_v15  ;;  %v2945_v28 = vrot.slane %v1507_v35, %v2423_v17  ;;  %v1217_v39 = vcombine.high %v1215_v60, %v1215_v60  ;;  %v2952_v10 = vrot.slane %v2823_v23, %v2423_v17  ;;  %v1630_v4 = vsel %vm1629_vm1, %v1174_v36, 0.0 }
  0xb6   : > { %3477 = vst [vmem:[#allocation23_spill] sm:$0xff] %v2937_v34  ;;  %3480 = vst [vmem:[#allocation26_spill] sm:$0xff] %v2948_v32  ;;  %v2955_v48 = vrot.slane %v1524_v1, %v2423_v17  ;;  %v1318_v22 = vcombine.high %v2833_v40, %v2833_v40  ;;  %v1319_v29 = vcombine.high %v2838_v38, %v2838_v38  ;;  %v1631_v57 = vsel %vm1629_vm1, %v1182_v49, 0.0 }
  0xb7   : > { %3479 = vst [vmem:[#allocation25_spill] sm:$0xff] %v2945_v28  ;;  %3481 = vst [vmem:[#allocation27_spill] sm:$0xff] %v2952_v10  ;;  %v1633_v37 = vsel %vm1629_vm1, %v1181_v9, 0.0  ;;  %v1335_v63 = vcombine.high %v2841_v61, %v2841_v61  ;;  %v1336_v43 = vcombine.high %v2851_v54, %v2851_v54  ;;  %v1352_v35 = vcombine.high %v2846_v6, %v2846_v6 }
  0xb8   : > { %3482 = vst [vmem:[#allocation28_spill] sm:$0xff] %v2955_v48  ;;  %v1632_v36 = vadd.f32 %v1631_v57, %v1630_v4  ;;  %v1353_v1 = vcombine.high %v2855_v46, %v2855_v46  ;;  %v1369_v30 = vcombine.high %v2858_v25, %v2858_v25  ;;  %v1370_v49 = vcombine.high %v2861_v8, %v2861_v8 }
  0xb9   : > { %v1635_v9 = vsel %vm1629_vm1, %v1183_v41, 0.0  ;;  %v1386_v55 = vcombine.high %v2864_v2, %v2864_v2  ;;  %v1387_v40 = vcombine.high %v2868_v52, %v2868_v52  ;;  %v1403_v4 = vcombine.high %v2871_v45, %v2871_v45 }
  0xba   : > { %v1634_v57 = vadd.f32 %v1633_v37, %v1632_v36  ;;  %v1404_v48 = vcombine.high %v2879_v44, %v2879_v44  ;;  %v1420_v32 = vcombine.high %v2888_v26, %v2888_v26  ;;  %v1421_v28 = vcombine.high %v2895_v50, %v2895_v50 }
  0xbb   : > { %v1637_v41 = vsel %vm1629_vm1, %v2874_v31, 0.0  ;;  %v1437_v15 = vcombine.high %v2898_v20, %v2898_v20  ;;  %v1438_v10 = vcombine.high %v2902_v56, %v2902_v56  ;;  %v1454_v37 = vcombine.high %v2905_v12, %v2905_v12 }
  0xbc   : > { %v1636_v36 = vadd.f32 %v1635_v9, %v1634_v57  ;;  %v1455_v23 = vcombine.high %v2909_v58, %v2909_v58  ;;  %v1471_v21 = vcombine.high %v2912_v59, %v2912_v59  ;;  %v1472_v51 = vcombine.high %v2918_v62, %v2918_v62 }
  0xbd   : > { %v1639_v31 = vsel %vm1629_vm1, %v1199_v16, 0.0  ;;  %v1488_v18 = vcombine.high %v2926_v33, %v2926_v33  ;;  %v1489_v17 = vcombine.high %v2931_v3, %v2931_v3  ;;  %v1641_v14 = vsel %vm1629_vm1, %v1198_v42, 0.0 }
  0xbe   : > { %v1638_v57 = vadd.f32 %v1637_v41, %v1636_v36  ;;  %v1643_v13 = vsel %vm1629_vm1, %v1200_v27, 0.0  ;;  %v1645_v53 = vsel %vm1629_vm1, %v2883_v47, 0.0  ;;  %v1647_v34 = vsel %vm1629_vm1, %v1216_v7, 0.0  ;;  %v3493_v36 = vld [vmem:[#allocation14_spill] sm:$0xff] }
  0xbf   : > { %v1649_v19 = vsel %vm1629_vm1, %v1215_v60, 0.0  ;;  %v1651_v11 = vsel %vm1629_vm1, %v1217_v39, 0.0  ;;  %v1653_v0 = vsel %vm1629_vm1, %v2892_v24, 0.0  ;;  %v3020_v9 = vsel %vm1629_vm1, %v1318_v22, 0.0 }
  0xc0   : > { %v1640_v16 = vadd.f32 %v1639_v31, %v1638_v57  ;;  %v3024_v42 = vsel %vm1629_vm1, %v2838_v38, 0.0  ;;  %v3027_v27 = vsel %vm1629_vm1, %v1319_v29, 0.0  ;;  %v3031_v47 = vsel %vm1629_vm1, %v2841_v61, 0.0  ;;  %v3494_v31 = vld [vmem:[#allocation11_spill] sm:$0xff] }
  0xc1   : > { %v3034_v7 = vsel %vm1629_vm1, %v1335_v63, 0.0  ;;  %v3038_v39 = vsel %vm1629_vm1, %v2851_v54, 0.0  ;;  %v3041_v22 = vsel %vm1629_vm1, %v1336_v43, 0.0  ;;  %v3045_v38 = vsel %vm1629_vm1, %v2846_v6, 0.0  ;;  %v3495_v57 = vld [vmem:[#allocation23_spill] sm:$0xff] }
  0xc2   : > { %v1642_v60 = vadd.f32 %v1641_v14, %v1640_v16  ;;  %v3048_v29 = vsel %vm1629_vm1, %v1352_v35, 0.0  ;;  %v3052_v14 = vsel %vm1629_vm1, %v2855_v46, 0.0  ;;  %v3055_v61 = vsel %vm1629_vm1, %v1353_v1, 0.0 }
  0xc3   : > { %v3059_v54 = vsel %vm1629_vm1, %v2858_v25, 0.0  ;;  %v3062_v43 = vsel %vm1629_vm1, %v1369_v30, 0.0  ;;  %v3066_v6 = vsel %vm1629_vm1, %v2861_v8, 0.0  ;;  %v3069_v35 = vsel %vm1629_vm1, %v1370_v49, 0.0 }
  0xc4   : > { %v1644_v63 = vadd.f32 %v1643_v13, %v1642_v60  ;;  %v3073_v46 = vsel %vm1629_vm1, %v2864_v2, 0.0  ;;  %v3076_v13 = vsel %vm1629_vm1, %v1386_v55, 0.0  ;;  %v3080_v25 = vsel %vm1629_vm1, %v2868_v52, 0.0 }
  0xc5   : > { %v3083_v1 = vsel %vm1629_vm1, %v1387_v40, 0.0  ;;  %v3087_v8 = vsel %vm1629_vm1, %v2871_v45, 0.0  ;;  %v3090_v49 = vsel %vm1629_vm1, %v1403_v4, 0.0  ;;  %v3094_v2 = vsel %vm1629_vm1, %v2879_v44, 0.0 }
  0xc6   : > { %v1646_v30 = vadd.f32 %v1645_v53, %v1644_v63  ;;  %v3097_v55 = vsel %vm1629_vm1, %v1404_v48, 0.0  ;;  %v3101_v53 = vsel %vm1629_vm1, %v2888_v26, 0.0  ;;  %v3104_v40 = vsel %vm1629_vm1, %v1420_v32, 0.0 }
  0xc7   : > { %v3108_v45 = vsel %vm1629_vm1, %v2895_v50, 0.0  ;;  %v3111_v4 = vsel %vm1629_vm1, %v1421_v28, 0.0  ;;  %v3115_v44 = vsel %vm1629_vm1, %v2898_v20, 0.0  ;;  %v3118_v48 = vsel %vm1629_vm1, %v1437_v15, 0.0 }
  0xc8   : > { %v1648_v52 = vadd.f32 %v1647_v34, %v1646_v30  ;;  %v3122_v26 = vsel %vm1629_vm1, %v2902_v56, 0.0  ;;  %v3125_v34 = vsel %vm1629_vm1, %v1438_v10, 0.0  ;;  %v3129_v50 = vsel %vm1629_vm1, %v2905_v12, 0.0 }
  0xc9   : > { %v3132_v32 = vsel %vm1629_vm1, %v1454_v37, 0.0  ;;  %v3136_v20 = vsel %vm1629_vm1, %v2909_v58, 0.0  ;;  %v3139_v15 = vsel %vm1629_vm1, %v1455_v23, 0.0  ;;  %v3143_v56 = vsel %vm1629_vm1, %v2912_v59, 0.0 }
  0xca   : > { %v1650_v28 = vadd.f32 %v1649_v19, %v1648_v52  ;;  %v3146_v10 = vsel %vm1629_vm1, %v1471_v21, 0.0  ;;  %v3150_v19 = vsel %vm1629_vm1, %v2918_v62, 0.0  ;;  %v3153_v12 = vsel %vm1629_vm1, %v1472_v51, 0.0  ;;  %v3489_v21 = vld [vmem:[#allocation20_spill] sm:$0xff] }
  0xcb   : > { %3483 = vst [vmem:[#allocation29_spill] sm:$0xff] %v3146_v10  ;;  %3484 = vst [vmem:[#allocation30_spill] sm:$0xff] %v3150_v19  ;;  %v3157_v58 = vsel %vm1629_vm1, %v2926_v33, 0.0  ;;  %v3160_v23 = vsel %vm1629_vm1, %v1488_v18, 0.0  ;;  %v3164_v59 = vsel %vm1629_vm1, %v2931_v3, 0.0  ;;  %v1234_v37 = vcombine.high %v3489_v21, %v3489_v21  ;;  %v335_v18 = vld [vmem:[%s2374_s14 + $0x28] sm:$0xff] }
  0xcc   : > { %3485 = vst [vmem:[#allocation31_spill] sm:$0xff] %v3153_v12  ;;  %v1652_v41 = vadd.f32 %v1651_v11, %v1650_v28  ;;  %3486 = vst [vmem:[#allocation32_spill] sm:$0xff] %v3157_v58  ;;  %v3490_v62 = vcombine.high %v2892_v24, %v2892_v24  ;;  %v3173_v11 = vsel %vm1629_vm1, %v1489_v17, 0.0  ;;  %v3177_v33 = vsel %vm1629_vm1, %v2934_v5, 0.0  ;;  %v3498_v17 = vld [vmem:[#allocation15_spill] sm:$0xff]  ;;  %v3499_v52 = vld [vmem:[#allocation16_spill] sm:$0xff] }
  0xcd   : > { %3487 = vst [vmem:[#allocation33_spill] sm:$0xff] %v3160_v23  ;;  %3488 = vst [vmem:[#allocation34_spill] sm:$0xff] %v3164_v59  ;;  %v490_v3 = vrot.slane %v3494_v31, %v3493_v36  ;;  %v1506_v16 = vcombine.high %v3495_v57, %v3495_v57  ;;  %v3496_v24 = vcombine.high %v2934_v5, %v2934_v5  ;;  %v1657_v36 = vsel %vm1629_vm1, %v3489_v21, 0.0  ;;  %v3503_v5 = vld [vmem:[#allocation13_spill] sm:$0xff]  ;;  %v3508_v58 = vld [vmem:[#allocation27_spill] sm:$0xff] }
  0xce   : > { %v1655_v51 = vsel %vm1629_vm1, %v3490_v62, 0.0  ;;  %3491 = vst [vmem:[#allocation20_spill] sm:$0xff] %v3173_v11  ;;  %3492 = vst [vmem:[#allocation35_spill] sm:$0xff] %v3177_v33  ;;  %v1654_v60 = vadd.f32 %v1653_v0, %v1652_v41  ;;  %v494_v30 = vrot.slane %v3494_v31, %v3498_v17  ;;  %v498_v28 = vrot.slane %v3494_v31, %v3499_v52  ;;  %v3500_v62 = vld [vmem:[#allocation17_spill] sm:$0xff]  ;;  %v3501_v11 = vld [vmem:[#allocation19_spill] sm:$0xff] }
  0xcf   : > { %v3188_v63 = vsel %vm1629_vm1, %v3496_v24, 0.0  ;;  %v502_v33 = vrot.slane %v3494_v31, %v3500_v62  ;;  %v3502_v0 = vld [vmem:[#allocation21_spill] sm:$0xff]  ;;  %v844_v59 = vrot.slane %v3503_v5, %v3501_v11  ;;  %v3505_v17 = vld [vmem:[#allocation22_spill] sm:$0xff]  ;;  %v3506_v52 = vld [vmem:[#allocation12_spill] sm:$0xff]  ;;  %v1250_v21 = vcombine.high %v3508_v58, %v3508_v58 }
  0xd0   : > { %3497 = vst [vmem:[#allocation14_spill] sm:$0xff] %v3188_v63  ;;  %v837_v41 = vrot.slane %v3502_v0, %v3501_v11  ;;  %v1656_v24 = vadd.f32 %v1655_v51, %v1654_v60  ;;  %v3204_v63 = vsel %vm1629_vm1, %v3495_v57, 0.0  ;;  %v1128_v23 = vmul.f32 %v3505_v17, %v335_v18  ;;  %v3509_v12 = vld [vmem:[#allocation24_spill] sm:$0xff] }
  0xd1   : > { %3504 = vst [vmem:[#allocation11_spill] sm:$0xff] %v3204_v63  ;;  %v3507_v31 = vcombine.high %v3506_v52, %v3506_v52  ;;  %v1659_v0 = vsel %vm1629_vm1, %v1234_v37, 0.0  ;;  %v1522_v51 = vcombine.high %v3509_v12, %v3509_v12  ;;  %v3217_v57 = vsel %vm1629_vm1, %v1506_v16, 0.0  ;;  %v3510_v16 = vld [vmem:[#allocation25_spill] sm:$0xff] }
  0xd2   : > { %v1658_v60 = vadd.f32 %v1657_v36, %v1656_v24  ;;  %v846_v5 = vcombine.low %v490_v3, %v494_v30  ;;  %v1661_v18 = vsel %vm1629_vm1, %v3508_v58, 0.0  ;;  %v845_v17 = vcombine.low %v837_v41, %v844_v59  ;;  %v336_v24 = vld [vmem:[%s2374_s14 + $0x30] sm:$0xff] }
  0xd3   : > { %v1249_v62 = vrot.slane %v3507_v31, %v3501_v11  ;;  %v847_v52 = vcombine.low %v498_v28, %v502_v33  ;;  %v3223_v63 = vsel %vm1629_vm1, %v3509_v12, 0.0  ;;  %v1252_v37 = vcombine.high %v1128_v23, %v1128_v23 }
  0xd4   : > { %v1660_v31 = vadd.f32 %v1659_v0, %v1658_v60  ;;  %v1259_v10 = vrot.slane %v1128_v23, %v3501_v11  ;;  %v1663_v36 = vsel %vm1629_vm1, %v1250_v21, 0.0  ;;  %v1523_v3 = vcombine.high %v3510_v16, %v3510_v16 }
  0xd5   : > { %v1251_v19 = vcombine.high %v1249_v62, %v1249_v62  ;;  %v3231_v58 = vsel %vm1629_vm1, %v1522_v51, 0.0  ;;  %v1665_v59 = vsel %vm1629_vm1, %v1249_v62, 0.0  ;;  %v854_v33 = vrot.slane %v846_v5, %v3501_v11  ;;  %v3512_v51 = vld [vmem:[#allocation26_spill] sm:$0xff] }
  0xd6   : > { %v1662_v30 = vadd.f32 %v1661_v18, %v1660_v31  ;;  %v861_v12 = vrot.slane %v847_v52, %v3501_v11  ;;  %v3238_v23 = vsel %vm1629_vm1, %v3510_v16, 0.0  ;;  %v1129_v41 = vmul.f32 %v845_v17, %v336_v24 }
  0xd7   : > { %3511 = vst [vmem:[#allocation23_spill] sm:$0xff] %v3238_v23  ;;  %v1266_v21 = vrot.slane %v1252_v37, %v3501_v11  ;;  %v1267_v0 = vcombine.high %v1259_v10, %v1259_v10  ;;  %v1667_v60 = vsel %vm1629_vm1, %v1251_v19, 0.0  ;;  %v1539_v18 = vcombine.high %v3512_v51, %v3512_v51  ;;  %v3514_v23 = vld [vmem:[#allocation28_spill] sm:$0xff] }
  0xd8   : > { %v1664_v28 = vadd.f32 %v1663_v36, %v1662_v30  ;;  %v3245_v5 = vsel %vm1629_vm1, %v1523_v3, 0.0  ;;  %v1669_v52 = vsel %vm1629_vm1, %v1259_v10, 0.0  ;;  %v862_v31 = vcombine.low %v854_v33, %v861_v12  ;;  %v337_v30 = vld [vmem:[%s2374_s14 + $0x38] sm:$0xff] }
  0xd9   : > { %v3250_v16 = vsel %vm1629_vm1, %v3512_v51, 0.0  ;;  %v1268_v17 = vcombine.high %v1266_v21, %v1266_v21  ;;  %v1269_v37 = vcombine.high %v1129_v41, %v1129_v41  ;;  %v1276_v24 = vrot.slane %v1129_v41, %v3501_v11 }
  0xda   : > { %v1666_v62 = vadd.f32 %v1665_v59, %v1664_v28  ;;  %3513 = vst [vmem:[#allocation15_spill] sm:$0xff] %v3250_v16  ;;  %v1671_v19 = vsel %vm1629_vm1, %v1267_v0, 0.0  ;;  %v1540_v59 = vcombine.high %v3514_v23, %v3514_v23  ;;  %v3258_v28 = vsel %vm1629_vm1, %v1539_v18, 0.0 }
  0xdb   : > { %v1673_v10 = vsel %vm1629_vm1, %v1266_v21, 0.0  ;;  %v3263_v12 = vsel %vm1629_vm1, %v3514_v23, 0.0  ;;  %v1283_v41 = vrot.slane %v1269_v37, %v3501_v11  ;;  %v1284_v51 = vcombine.high %v1276_v24, %v1276_v24 }
  0xdc   : > { %v1668_v36 = vadd.f32 %v1667_v60, %v1666_v62  ;;  %v1130_v60 = vmul.f32 %v862_v31, %v337_v30  ;;  %v1675_v0 = vsel %vm1629_vm1, %v1268_v17, 0.0  ;;  %v3268_v16 = vsel %vm1629_vm1, %v1540_v59, 0.0 }
  0xdd   : > { %3515 = vst [vmem:[#allocation16_spill] sm:$0xff] %v3268_v16  ;;  %v1677_v18 = vsel %vm1629_vm1, %v1276_v24, 0.0  ;;  %v1679_v23 = vsel %vm1629_vm1, %v1284_v51, 0.0  ;;  %v1681_v31 = vsel %vm1629_vm1, %v1283_v41, 0.0 }
  0xde   : > { %v1670_v3 = vadd.f32 %v1669_v52, %v1668_v36  ;;  %v1285_v36 = vcombine.high %v1283_v41, %v1283_v41  ;;  %v1286_v21 = vcombine.high %v1130_v60, %v1130_v60 }
  0xe0   : > { %v1672_v33 = vadd.f32 %v1671_v19, %v1670_v3  ;;  %v1293_v19 = vrot.slane %v1130_v60, %v3501_v11  ;;  %v1300_v30 = vrot.slane %v1286_v21, %v3501_v11 }
  0xe2   : > { %v1674_v62 = vadd.f32 %v1673_v10, %v1672_v33  ;;  %v1301_v17 = vcombine.high %v1293_v19, %v1293_v19  ;;  %v1683_v10 = vsel %vm1629_vm1, %v1285_v36, 0.0  ;;  %v1685_v33 = vsel %vm1629_vm1, %v1293_v19, 0.0 }
  0xe3   : > { %v1689_v60 = vsel %vm1629_vm1, %v1300_v30, 0.0 }
  0xe4   : > { %v1676_v52 = vadd.f32 %v1675_v0, %v1674_v62  ;;  %v1302_v0 = vcombine.high %v1300_v30, %v1300_v30  ;;  %v1687_v62 = vsel %vm1629_vm1, %v1301_v17, 0.0 }
  0xe6   : > { %v1678_v3 = vadd.f32 %v1677_v18, %v1676_v52  ;;  %v1691_v18 = vsel %vm1629_vm1, %v1302_v0, 0.0  ;;  %v3516_v52 = vld [vmem:[#allocation18_spill] sm:$0xff]  ;;  %v3519_v0 = vld [vmem:[#allocation31_spill] sm:$0xff] }
  0xe7   : > { %v1693_v11 = vsel %vm1629_vm1, %v3516_v52, 0.0  ;;  %v3526_v52 = vld [vmem:[#allocation11_spill] sm:$0xff] }
  0xe8   : > { %v1680_v37 = vadd.f32 %v1679_v23, %v1678_v3 }
  0xea   : > { %v1682_v59 = vadd.f32 %v1681_v31, %v1680_v37 }
  0xec   : > { %v1684_v24 = vadd.f32 %v1683_v10, %v1682_v59 }
  0xee   : > { %v1686_v16 = vadd.f32 %v1685_v33, %v1684_v24  ;;  %v3517_v33 = vld [vmem:[#allocation29_spill] sm:$0xff]  ;;  %v3518_v24 = vld [vmem:[#allocation30_spill] sm:$0xff] }
  0xf0   : > { %v1688_v51 = vadd.f32 %v1687_v62, %v1686_v16  ;;  %v3520_v62 = vld [vmem:[#allocation32_spill] sm:$0xff] }
  0xf2   : > { %v1690_v41 = vadd.f32 %v1689_v60, %v1688_v51  ;;  %v3521_v60 = vld [vmem:[#allocation33_spill] sm:$0xff]  ;;  %v3522_v51 = vld [vmem:[#allocation34_spill] sm:$0xff] }
  0xf4   : > { %v1692_v21 = vadd.f32 %v1691_v18, %v1690_v41  ;;  %v3524_v18 = vld [vmem:[#allocation35_spill] sm:$0xff]  ;;  %v3525_v41 = vld [vmem:[#allocation14_spill] sm:$0xff] }
  0xf6   : > { %v1694_v23 = vadd.f32 %v1693_v11, %v1692_v21 }
  0xf8   : > { %v1696_v36 = vadd.f32 %v3020_v9, %v1694_v23 }
  0xfa   : > { %v1698_v19 = vadd.f32 %v3024_v42, %v1696_v36 }
  0xfc   : > { %v1700_v3 = vadd.f32 %v3027_v27, %v1698_v19  ;;  %v3527_v19 = vld [vmem:[#allocation23_spill] sm:$0xff] }
  0xfe   : > { %v1702_v31 = vadd.f32 %v3031_v47, %v1700_v3 }
 0x100   : > { %v1704_v37 = vadd.f32 %v3034_v7, %v1702_v31 }
 0x102   : > { %v1706_v16 = vadd.f32 %v3038_v39, %v1704_v37  ;;  %v3528_v37 = vld [vmem:[#allocation15_spill] sm:$0xff] }
 0x104   : > { %v1708_v30 = vadd.f32 %v3041_v22, %v1706_v16 }
 0x106   : > { %v1710_v17 = vadd.f32 %v3045_v38, %v1708_v30 }
 0x108   : > { %v1712_v10 = vadd.f32 %v3048_v29, %v1710_v17 }
 0x10a   : > { %v1714_v59 = vadd.f32 %v3052_v14, %v1712_v10  ;;  %v3529_v10 = vld [vmem:[#allocation16_spill] sm:$0xff] }
 0x10c   : > { %v1716_v9 = vadd.f32 %v3055_v61, %v1714_v59 }
 0x10e   : > { %v1718_v42 = vadd.f32 %v3059_v54, %v1716_v9  ;;  %v352_v9 = vld [vmem:[%s2395_s26] sm:$0x3] }
 0x110   : > { %v1720_v27 = vadd.f32 %v3062_v43, %v1718_v42 }
 0x112   : > { %v1722_v47 = vadd.f32 %v3066_v6, %v1720_v27 }
 0x114   : > { %v1724_v7 = vadd.f32 %v3069_v35, %v1722_v47 }
 0x116   : > { %v1726_v39 = vadd.f32 %v3073_v46, %v1724_v7 }
 0x118   : > { %v1728_v22 = vadd.f32 %v3076_v13, %v1726_v39 }
 0x11a   : > { %v1730_v38 = vadd.f32 %v3080_v25, %v1728_v22 }
 0x11c   : > { %v1732_v29 = vadd.f32 %v3083_v1, %v1730_v38 }
 0x11e   : > { %v1734_v14 = vadd.f32 %v3087_v8, %v1732_v29 }
 0x120   : > { %v1736_v61 = vadd.f32 %v3090_v49, %v1734_v14 }
 0x122   : > { %v1738_v54 = vadd.f32 %v3094_v2, %v1736_v61 }
 0x124   : > { %v1740_v43 = vadd.f32 %v3097_v55, %v1738_v54 }
 0x126   : > { %v1742_v6 = vadd.f32 %v3101_v53, %v1740_v43 }
 0x128   : > { %v1744_v35 = vadd.f32 %v3104_v40, %v1742_v6 }
 0x12a   : > { %v1746_v46 = vadd.f32 %v3108_v45, %v1744_v35 }
 0x12c   : > { %v1748_v13 = vadd.f32 %v3111_v4, %v1746_v46 }
 0x12e   : > { %v1750_v25 = vadd.f32 %v3115_v44, %v1748_v13 }
 0x130   : > { %v1752_v1 = vadd.f32 %v3118_v48, %v1750_v25 }
 0x132   : > { %v1754_v8 = vadd.f32 %v3122_v26, %v1752_v1 }
 0x134   : > { %v1756_v49 = vadd.f32 %v3125_v34, %v1754_v8 }
 0x136   : > { %v1758_v2 = vadd.f32 %v3129_v50, %v1756_v49 }
 0x138   : > { %v1760_v55 = vadd.f32 %v3132_v32, %v1758_v2  ;;  %v3523_v32 = vld [vmem:[#allocation20_spill] sm:$0xff] }
 0x13a   : > { %v1762_v53 = vadd.f32 %v3136_v20, %v1760_v55 }
 0x13c   : > { %v1764_v40 = vadd.f32 %v3139_v15, %v1762_v53 }
 0x13e   : > { %v1766_v45 = vadd.f32 %v3143_v56, %v1764_v40 }
 0x140   : > { %v1768_v4 = vadd.f32 %v3517_v33, %v1766_v45 }
 0x142   : > { %v1770_v44 = vadd.f32 %v3518_v24, %v1768_v4 }
 0x144   : > { %v1772_v48 = vadd.f32 %v3519_v0, %v1770_v44 }
 0x146   : > { %v1774_v26 = vadd.f32 %v3520_v62, %v1772_v48 }
 0x148   : > { %v1776_v34 = vadd.f32 %v3521_v60, %v1774_v26 }
 0x14a   : > { %v1778_v50 = vadd.f32 %v3522_v51, %v1776_v34 }
 0x14c   : > { %v1780_v20 = vadd.f32 %v3523_v32, %v1778_v50 }
 0x14e   : > { %v1782_v15 = vadd.f32 %v3524_v18, %v1780_v20 }
 0x150   : > { %v1784_v56 = vadd.f32 %v3525_v41, %v1782_v15 }
 0x152   : > { %v1786_v11 = vadd.f32 %v3526_v52, %v1784_v56 }
 0x154   : > { %v1788_v21 = vadd.f32 %v3217_v57, %v1786_v11 }
 0x156   : > { %v1790_v23 = vadd.f32 %v3223_v63, %v1788_v21  ;;  %v1816_v63 = vld [vmem:[%s3366_s1] sm:$0x3] (%p1810_p12) }
 0x158   : > { %v1792_v36 = vadd.f32 %v3231_v58, %v1790_v23  ;;  %v1818_v58 = vstv (%p1810_p12), %s1817_s22 }
 0x15a   : > { %v1794_v3 = vadd.f32 %v3527_v19, %v1792_v36 }
 0x15c   : > { %v1796_v31 = vadd.f32 %v3245_v5, %v1794_v3  ;;  %v1819_v5 = vmul.f32 (%p1810_p12), %v1818_v58, %v1816_v63 }
 0x15e   : > { %v1798_v16 = vadd.f32 %v3528_v37, %v1796_v31 }
 0x160   : > { %v1800_v30 = vadd.f32 %v3258_v28, %v1798_v16  ;;  %v1821_v28 = vstv (%p1810_p12), %s1978_s23 }
 0x161   : > { %v1822_v27 = vadd.f32 (%p1810_p12), %v1821_v28, %v1819_v5 }
 0x162   : > { %v1802_v17 = vadd.f32 %v3263_v12, %v1800_v30 }
 0x164   : > { %v1804_v59 = vadd.f32 %v3529_v10, %v1802_v17 }
 0x166   : > { %1805 = vadd.xlane.f32.xlu0 %v1804_v59 }
 0x1f0   : > { %1814 = sbr.rel (!%p1810_p12) target bundleno = 513 (0x201), region = 56 }
 0x1f3   : > { %v1806_v57 = vpop.xlane.xlu0 %1805 }
 0x1f4   : > { %v1807_v42 = vadd.f32 %v1806_v57, %v352_v9 }
 0x1f6   : > { %1809 = vst.msk [vmem:[%s2395_s26] sm:$0x3] %vm328_vm0, %v1807_v42 }
 0x1fd   : > { %v1815_v12 = vld [vmem:[%s2395_s26] sm:$0x3] }
 0x1fe   : > { %v1823_v47 = vadd.f32 %v1822_v27, %v1815_v12 }
 0x200   : > { %1824 = vst.msk [vmem:[%s2395_s26] sm:$0x3] %vm328_vm0, %v1823_v47 }
 0x201 PF: > { %s21_s20 = sadd.s32 1, %s2194_s20   ;;  %s3530_s15 = smov %s2178_s16 }
 0x202   : > { %p18_p8 = scmp.ge.s32.totalorder %s21_s20, 4   ;;  %s3531_s16 = smov %s2182_s17 }
 0x203   : > { %s3532_s17 = smov %s2302_s10  ;;  %s3533_s18 = smov %s2190_s19 }
 0x204   : > { %s3534_s19 = smov %s3536_s29  ;;  %20 = sbr.rel (!%p18_p8) target bundleno = 7 (0x7), region = 105 }
 0x20b   :  { %1850 = vsyncpa [#allocation3], 1 }
 0x20c   :  { %1852 = vsyncpa [#allocation3 + $0x1], 1 }
 0x20d   :  { %1853 = vsyncpa [#allocation6], 1 }
 0x20e   :  { %1855 = vsyncpa [#allocation6 + $0x1], 1 }
 0x20f   :  { %1856 = vsyncpa [#allocation4], 1 }
 0x210   :  { %1858 = vsyncpa [#allocation4 + $0x1], 1 }

</bundles_post_ra>
